<compile_context>
chip_gen: v7x
topology: tpu7x:2x2x1
jax: 0.10.0
libtpu: 0.0.40
codegen_flags: <defaults>
</compile_context>

<pallas_src>
import functools

import jax
import jax.numpy as jnp
from jax.experimental import pallas as pl
from jax.experimental.pallas import tpu as pltpu


# ---------------------------------------------------------------------------
# Chip introspection (defensive: conservative defaults if the query fails).
# ---------------------------------------------------------------------------
def _tpu_config():
    vmem_bytes = 64 << 20          # conservative default (v7x per-TC VMEM)
    num_cores = None
    try:
        info = pltpu.get_tpu_info()
        vmem_bytes = int(getattr(info, "vmem_capacity_bytes", vmem_bytes))
        for name in ("tensorcores_per_chip", "num_tensorcores", "num_cores",
                     "core_count"):
            val = getattr(info, name, None)
            if val:
                num_cores = int(val)
                break
    except Exception:
        pass
    if num_cores is None:
        # Heuristic: 64 MiB/TC chips (v7x) have 2 TensorCores; 128 MiB chips
        # (v5e/v6e) have 1.
        num_cores = 2 if vmem_bytes <= (64 << 20) else 1
    # Scoped VMEM limit: half of physical, capped at 64 MiB
    # (v5e/v6e -> 64 MiB, v7x -> 32 MiB).  Per-step x budget: 3/4 of that
    # (weights + internal scratch are tiny; leave headroom).
    vmem_limit = min(vmem_bytes // 2, 64 << 20)
    x_budget = (vmem_limit * 3) // 4
    return vmem_limit, x_budget, num_cores


# ---------------------------------------------------------------------------
# Kernels
# ---------------------------------------------------------------------------
def _se_fused_kernel(x_ref, w_ref, o_ref, *, planes):
    # x_ref: (Nb, C, HWp); w_ref: (C, 2P) float32, first P columns pre-scaled
    # by 1/(H*W) so the pooled *sum* can be used directly.
    s = jnp.sum(x_ref[...], axis=-1, keepdims=True, dtype=jnp.float32)   # (Nb,C,1)
    w = w_ref[...]
    w1t = w[:, :planes]                                                  # (C,P)
    w2 = w[:, planes:]                                                   # (C,P)
    # 1x1 conv #1 (no bias) as broadcast-mul + sublane reduce (skip the MXU).
    h = jnp.sum(w1t[None, :, :] * s, axis=1, keepdims=True)             # (Nb,1,P)
    h = jnp.clip(h, 0.0, 6.0)                                            # ReLU6
    # 1x1 conv #2 (no bias).
    g = jnp.sum(w2[None, :, :] * h, axis=-1, keepdims=True)             # (Nb,C,1)
    g = jax.nn.sigmoid(g)
    # Excite: re-read the x block (same VMEM, no extra HBM traffic).
    o_ref[...] = x_ref[...] * g.astype(o_ref.dtype)


def _se_pool_kernel(x_ref, s_ref):
    # Per-(n, c) spatial sum, accumulated in float32.
    s_ref[...] = jnp.sum(x_ref[...], axis=-1, keepdims=True, dtype=jnp.float32)


def _se_scale_kernel(x_ref, g_ref, o_ref):
    o_ref[...] = x_ref[...] * g_ref[...].astype(o_ref.dtype)


# ---------------------------------------------------------------------------
# Wrapper
# ---------------------------------------------------------------------------
def se_module(x, w1, w2, *, block_n=None, x_block_budget_bytes=None):
    """PyTorch SEModule forward.  x: (N,C,H,W); w1: (P,C); w2: (C,P)."""
    N, C, H, W = x.shape
    P = w1.shape[0]
    HW = H * W
    HWp = ((HW + 127) // 128) * 128        # lane-dense spatial length
    itemsize = jnp.dtype(x.dtype).itemsize

    vmem_limit, x_budget, num_cores = _tpu_config()
    if x_block_budget_bytes is not None:
        x_budget = x_block_budget_bytes

    # Layout plumbing in XLA (not the kernel): lane-dense x, zero-padded
    # spatial axis, single float32 weight operand with 1/HW folded in.
    x2 = x.reshape(N, C, HW)
    if HWp != HW:
        x2 = jnp.pad(x2, ((0, 0), (0, 0), (0, HWp - HW)))
    wcat = jnp.concatenate(
        [w1.T.astype(jnp.float32) / HW, w2.astype(jnp.float32)], axis=1)  # (C,2P)

    per_img = C * HWp * itemsize
    fits_fused = 4 * per_img <= x_budget        # double-buffered in + out

    if fits_fused:
        if block_n is None:
            cap = max(1, x_budget // (4 * per_img))
            block_n = min(N, cap)
            if num_cores >= 2 and N >= 2:
                # Keep >= num_cores grid steps so the parallel batch axis can
                # shard across TensorCores (v7x); 1-TC chips take one block.
                block_n = max(1, min(block_n, pl.cdiv(N, num_cores)))
        grid = (pl.cdiv(N, block_n),)
        cost = pl.CostEstimate(
            flops=int(3 * N * C * HWp + 4 * N * C * P),
            transcendentals=int(N * C),
            bytes_accessed=int(2 * N * C * HWp * itemsize + wcat.size * 4),
        )
        out = pl.pallas_call(
            functools.partial(_se_fused_kernel, planes=P),
            out_shape=jax.ShapeDtypeStruct((N, C, HWp), x.dtype),
            grid=grid,
            in_specs=[
                pl.BlockSpec((block_n, C, HWp), lambda n: (n, 0, 0)),
                pl.BlockSpec((C, 2 * P), lambda n: (0, 0)),
            ],
            out_specs=pl.BlockSpec((block_n, C, HWp), lambda n: (n, 0, 0)),
            compiler_params=pltpu.CompilerParams(
                dimension_semantics=("parallel",),
                vmem_limit_bytes=vmem_limit),
            cost_estimate=cost,
        )(x2, wcat)
    else:
        # Large C*HW fallback: pool over (N, C) tiles, tiny gate math in XLA,
        # then scale over (N, C) tiles.
        bn = N if N <= 8 else 8
        bc = max(8, (x_budget // (4 * bn * HWp * itemsize)) // 8 * 8)
        bc = C if C <= 8 else min(bc, C)
        grid2 = (pl.cdiv(N, bn), pl.cdiv(C, bc))
        pooled = pl.pallas_call(
            _se_pool_kernel,
            out_shape=jax.ShapeDtypeStruct((N, C, 1), jnp.float32),
            grid=grid2,
            in_specs=[pl.BlockSpec((bn, bc, HWp), lambda i, j: (i, j, 0))],
            out_specs=pl.BlockSpec((bn, bc, 1), lambda i, j: (i, j, 0)),
            compiler_params=pltpu.CompilerParams(
                dimension_semantics=("parallel", "parallel"),
                vmem_limit_bytes=vmem_limit),
        )(x2)
        m = pooled[:, :, 0]                                    # (N,C) spatial sums
        h = jnp.clip(m @ wcat[:, :P], 0.0, 6.0)                # == mean @ w1.T
        g = jax.nn.sigmoid(h @ wcat[:, P:].T)[:, :, None]      # (N,C,1) float32
        out = pl.pallas_call(
            _se_scale_kernel,
            out_shape=jax.ShapeDtypeStruct((N, C, HWp), x.dtype),
            grid=grid2,
            in_specs=[
                pl.BlockSpec((bn, bc, HWp), lambda i, j: (i, j, 0)),
                pl.BlockSpec((bn, bc, 1), lambda i, j: (i, j, 0)),
            ],
            out_specs=pl.BlockSpec((bn, bc, HWp), lambda i, j: (i, j, 0)),
            compiler_params=pltpu.CompilerParams(
                dimension_semantics=("parallel", "parallel"),
                vmem_limit_bytes=vmem_limit),
        )(x2, g)

    if HWp != HW:
        out = out[:, :, :HW]
    return out.reshape(N, C, H, W)


def se_ref(x, w1, w2):
    # Pure-JAX reference mirroring the PyTorch forward (float32 gate math).
    m = jnp.mean(x.astype(jnp.float32), axis=(2, 3))           # (N,C)
    h = jnp.clip(m @ w1.T.astype(jnp.float32), 0.0, 6.0)       # (N,P)
    g = jax.nn.sigmoid(h @ w2.T.astype(jnp.float32))           # (N,C)
    return x * g[:, :, None, None].astype(x.dtype)


if __name__ == "__main__":
    key = jax.random.PRNGKey(0)

    def make(N, C, H, W, reduction):
        P = C // reduction
        kx, k1, k2 = jax.random.split(jax.random.fold_in(key, N * 1000 + C), 3)
        x = jax.random.normal(kx, (N, C, H, W), dtype=jnp.float32)
        w1 = jax.random.normal(k1, (P, C), dtype=jnp.float32) / jnp.sqrt(C)
        w2 = jax.random.normal(k2, (C, P), dtype=jnp.float32) / jnp.sqrt(P)
        return x, w1, w2

    # 1) Lane-dense shape (HW multiple of 128): fused single-kernel path.
    x, w1, w2 = make(2, 32, 16, 16, reduction=4)
    out = jax.block_until_ready(se_module(x, w1, w2))
    assert out.shape == x.shape
    assert jnp.allclose(out, se_ref(x, w1, w2), atol=1e-5, rtol=1e-5)

    # 2) Non-divisible batch (N=3) + HW not a multiple of 128 (14x14 -> padded).
    x, w1, w2 = make(3, 16, 14, 14, reduction=4)
    out = jax.block_until_ready(se_module(x, w1, w2))
    assert jnp.allclose(out, se_ref(x, w1, w2), atol=1e-5, rtol=1e-5)

    # 3) Force the large-footprint fallback (pool -> gate -> scale split).
    x, w1, w2 = make(2, 32, 16, 16, reduction=4)
    out = jax.block_until_ready(se_module(x, w1, w2, x_block_budget_bytes=64 * 1024))
    assert jnp.allclose(out, se_ref(x, w1, w2), atol=1e-5, rtol=1e-5)

    print("KERNEL_OK")
</pallas_src>

<mosaic_0001>
module attributes {stable_mosaic.version = 11 : i64} {
  func.func @_se_fused_kernel(%arg0: i32, %arg1: memref<1x32x256xf32, #tpu.memory_space<vmem>>, %arg2: memref<32x16xf32, #tpu.memory_space<vmem>>, %arg3: memref<1x32x256xf32, #tpu.memory_space<vmem>>) attributes {dimension_semantics = [#tpu.dimension_semantics<parallel>], iteration_bounds = array<i64: 2>, scalar_prefetch = 0 : i64, scratch_operands = 0 : i64, tpu.core_type = #tpu.core_type<tc>, window_params = [{transform_indices = @transform_0, window_bounds = array<i64: 1, 32, 256>}, {pipeline_mode = #tpu.pipeline_mode<synchronous>, transform_indices = @transform_1, window_bounds = array<i64: 32, 16>}, {transform_indices = @transform_2, window_bounds = array<i64: 1, 32, 256>}]} {
    %c0 = arith.constant 0 : index
    %c0_0 = arith.constant 0 : index
    %c0_1 = arith.constant 0 : index
    %0 = vector.load %arg1[%c0, %c0_0, %c0_1] : memref<1x32x256xf32, #tpu.memory_space<vmem>>, vector<1x32x256xf32>
    %cst = arith.constant dense<0.000000e+00> : vector<1x32xf32>
    %1 = vector.multi_reduction <add>, %0, %cst [2] : vector<1x32x256xf32> to vector<1x32xf32>
    %2 = vector.shape_cast %1 : vector<1x32xf32> to vector<1x32x1xf32>
    %c0_2 = arith.constant 0 : index
    %c0_3 = arith.constant 0 : index
    %3 = vector.load %arg2[%c0_2, %c0_3] : memref<32x16xf32, #tpu.memory_space<vmem>>, vector<32x16xf32>
    %4 = vector.extract_strided_slice %3 {offsets = [0, 0], sizes = [32, 8], strides = [1, 1]} : vector<32x16xf32> to vector<32x8xf32>
    %5 = vector.extract_strided_slice %3 {offsets = [0, 8], sizes = [32, 8], strides = [1, 1]} : vector<32x16xf32> to vector<32x8xf32>
    %6 = vector.shape_cast %4 : vector<32x8xf32> to vector<1x32x8xf32>
    %7 = vector.broadcast %2 : vector<1x32x1xf32> to vector<1x32x8xf32>
    %8 = arith.mulf %6, %7 : vector<1x32x8xf32>
    %cst_4 = arith.constant dense<0.000000e+00> : vector<1x8xf32>
    %9 = vector.multi_reduction <add>, %8, %cst_4 [1] : vector<1x32x8xf32> to vector<1x8xf32>
    %10 = vector.shape_cast %9 : vector<1x8xf32> to vector<1x1x8xf32>
    %cst_5 = arith.constant 0.000000e+00 : f32
    %cst_6 = arith.constant 6.000000e+00 : f32
    %11 = vector.broadcast %cst_5 : f32 to vector<1x1x8xf32>
    %12 = arith.maximumf %11, %10 : vector<1x1x8xf32>
    %13 = vector.broadcast %cst_6 : f32 to vector<1x1x8xf32>
    %14 = arith.minimumf %13, %12 : vector<1x1x8xf32>
    %15 = vector.shape_cast %5 : vector<32x8xf32> to vector<1x32x8xf32>
    %16 = vector.broadcast %14 : vector<1x1x8xf32> to vector<1x32x8xf32>
    %17 = arith.mulf %15, %16 : vector<1x32x8xf32>
    %cst_7 = arith.constant dense<0.000000e+00> : vector<1x32xf32>
    %18 = vector.multi_reduction <add>, %17, %cst_7 [2] : vector<1x32x8xf32> to vector<1x32xf32>
    %19 = vector.shape_cast %18 : vector<1x32xf32> to vector<1x32x1xf32>
    %20 = arith.negf %19 : vector<1x32x1xf32>
    %21 = math.exp %20 : vector<1x32x1xf32>
    %cst_8 = arith.constant 1.000000e+00 : f32
    %22 = vector.broadcast %cst_8 : f32 to vector<1x32x1xf32>
    %23 = arith.addf %22, %21 : vector<1x32x1xf32>
    %24 = arith.divf %22, %23 : vector<1x32x1xf32>
    %c0_9 = arith.constant 0 : index
    %c0_10 = arith.constant 0 : index
    %c0_11 = arith.constant 0 : index
    %25 = vector.load %arg1[%c0_9, %c0_10, %c0_11] : memref<1x32x256xf32, #tpu.memory_space<vmem>>, vector<1x32x256xf32>
    %26 = vector.broadcast %24 : vector<1x32x1xf32> to vector<1x32x256xf32>
    %27 = arith.mulf %25, %26 : vector<1x32x256xf32>
    %c0_12 = arith.constant 0 : index
    %c0_13 = arith.constant 0 : index
    %c0_14 = arith.constant 0 : index
    %28 = vector.load %arg3[%c0_12, %c0_13, %c0_14] : memref<1x32x256xf32, #tpu.memory_space<vmem>>, vector<1x32x256xf32>
    tpu.vector_store %arg3[%c0_12, %c0_13, %c0_14], %27 {strides = array<i32>} : memref<1x32x256xf32, #tpu.memory_space<vmem>>, vector<1x32x256xf32>,
    return
  }
  func.func @transform_0(%arg0: i32) -> (i32, i32, i32) {
    %c0_i32 = arith.constant 0 : i32
    %c0_i32_0 = arith.constant 0 : i32
    %c0_i32_1 = arith.constant 0 : i32
    return %arg0, %c0_i32, %c0_i32_0 : i32, i32, i32
  }
  func.func @transform_1(%arg0: i32) -> (i32, i32) {
    %c0_i32 = arith.constant 0 : i32
    %c0_i32_0 = arith.constant 0 : i32
    %c0_i32_1 = arith.constant 0 : i32
    return %c0_i32, %c0_i32_0 : i32, i32
  }
  func.func @transform_2(%arg0: i32) -> (i32, i32, i32) {
    %c0_i32 = arith.constant 0 : i32
    %c0_i32_0 = arith.constant 0 : i32
    %c0_i32_1 = arith.constant 0 : i32
    return %arg0, %c0_i32, %c0_i32_0 : i32, i32, i32
  }
}

</mosaic_0001>

<bundles_post_ra>
// kernel: tpu_custom_call.1
= control target key start
LH: loop header
LB: loop body
LE: loop exit
PB: predicated region body
PF: predicated region fallthrough
CT: control target
= control target key end

     0   :  { %7 = vsyncpa [#allocation3], 0  ;;  %s796_s0 = inlined_call_operand.hbm [shape: f32[2,32,256], index: 0, kind: input, shape index: {}]   ;;  %s797_s1 = inlined_call_operand.vmem [shape: f32[32,16], index: 1, kind: input, shape index: {}]   ;;  %s798_s2 = inlined_call_operand.hbm [shape: f32[2,32,256], index: 2, kind: output, shape index: {}]  }
   0x1   :  { %9 = vsyncpa [#allocation3 + $0x1], 0 }
   0x2   :  { %10 = vsyncpa [#allocation4], 0 }
   0x3   :  { %12 = vsyncpa [#allocation4 + $0x1], 0  ;;  %s578_s9 = smov 0   ;;  %s580_s10 = smov 0  }
   0x4   :  { %s582_s11 = smov 0   ;;  %s584_s12 = smov 0  }
   0x5 LB: > { %s599_s13 = sadd.s32 4294967295, %s553_s12   ;;  %s369_s14 = sadd.s32 4294967294, %s553_s12   ;;  %s553_s12 = sphi %s584_s12, %s811_s12   ;;  %s549_s11 = sphi %s582_s11, %s810_s11   ;;  %s545_s10 = sphi %s580_s10, %s809_s10   ;;  %s541_s9 = sphi %s578_s9, %s808_s9  }
   0x6   : > { %s603_s15 = sadd.s32 1, %s553_s12   ;;  %s25_s16 = sadd.s32 1, %s549_s11 }
   0x7   : > { %s22_s17 = ssub.s32 %s553_s12, %s603_s15  ;;  %p32_p0 = scmp.ne.s32.totalorder %s549_s11, %s545_s10 }
   0x8   : > { %p23_p1 = scmp.eq.s32.totalorder %s22_s17, 0  ;;  %p33_p2 = scmp.eq.s32.totalorder %s553_s12, 0 }
   0x9   : > { %p38_p3 = scmp.ne.s32.totalorder %s545_s10, %s541_s9  ;;  %p39_p4 = scmp.eq.s32.totalorder %s599_s13, 0 }
   0xa   : > { %s615_s18 = scalar_select %p23_p1, %s549_s11, %s25_s16  }
   0xb   : > { %p617_p5 = por %p33_p2, %p32_p0  ;;  %p621_p6 = por %p39_p4, %p38_p3 }
   0xc   : > { %p83_p7 = scmp.eq.s32.totalorder %s599_s13, 1  ;;  %p89_p8 = scmp.eq.s32.totalorder %s369_s14, 1 }
   0xd   : > { %p401_p10 = scmp.lt.s32.totalorder %s553_s12, 2  ;;  %s112_s23 = sand.u32 1, %s549_s11  }
   0xe   : > { %p628_p11 = por %p83_p7, %p32_p0  ;;  %p632_p12 = por %p89_p8, %p38_p3 }
   0xf   : > { %s387_s24 = sshll.u32 %s553_s12, 10  ;;  %s372_s25 = sshll.u32 %s112_s23, 6 }
  0x10   : > { %s802_s21 = scalar_select %p628_p11, 1, 0 }
  0x11   : > { %s803_s22 = scalar_select %p632_p12, 1, 0 }
  0x12   : > { %s641_s28 = scalar_lea.hbm %s796_s0, %s387_s24  ;;  %s116_s29 = scalar_lea.vmem [#allocation2], %s372_s25 }
  0x13   : > { %s123_s30 = sshll.u32 %s116_s29, 4  ;;  %p645_p13 = pnand %p401_p10, %p617_p5  ;;  %s649_s30 = int_to_ptr.vmem [resolvable:$true] %s123_s30 }
  0x14   : > { %s651_s4 = scalar_lea.sflag [#allocation3], %s112_s23  ;;  %s457_s5 = scalar_lea.hbm %s641_s28, 1024 }
  0x15   : > { %p458_p0 = scmp.ne.s32.totalorder %s641_s28, %s457_s5  ;;  %p459_p1 = pneg %p645_p13 }
  0x16   : > { %s462_s8 = scalar_lea.hbm %s796_s0, 2048  ;;  %p463_p4 = scmp.lt.u32.totalorder %s641_s28, %s796_s0 }
  0x17   : > { %p460_p2 = pnand %p459_p1, %p458_p0  ;;  %p464_p5 = scmp.lt.u32.totalorder %s462_s8, %s457_s5 }
  0x18   : > { %p466_p8 = scmp.lt.u32.totalorder %s457_s5, %s641_s28 }
  0x19   : > { %p461_p3 = pneg %p460_p2  ;;  %p465_p7 = por %p464_p5, %p463_p4 }
  0x1b   : > { %p467_p10 = por %p466_p8, %p465_p7 }
  0x1d   : > { %p468_p9 = pnand %p467_p10, %p461_p3 }
  0x1f   : > { %471 = shalt.err (!%p468_p9)
}
  0x20   : > { %s472_s17 = scalar_lea.vmem %s649_s30, 1024  ;;  %s555_s19 = smov [#allocation2]  }
  0x21   : > { %p473_p0 = scmp.ne.s32.totalorder %s649_s30, %s472_s17  ;;  %s477_s23 = sshll.u32 %s555_s19, 4  ;;  %s478_s23 = int_to_ptr.vmem [resolvable:$false] %s477_s23 }
  0x22   : > { %s479_s24 = scalar_lea.vmem %s478_s23, 2048  ;;  %p480_p11 = scmp.lt.s32.totalorder %s649_s30, %s478_s23 }
  0x23   : > { %p475_p2 = pnand %p473_p0, %p459_p1  ;;  %p481_p4 = scmp.lt.s32.totalorder %s479_s24, %s472_s17 }
  0x25   : > { %p476_p12 = pneg %p475_p2  ;;  %p482_p5 = por %p481_p4, %p480_p11 }
  0x27   : > { %p483_p7 = pnand %p482_p5, %p476_p12 }
  0x29   : > { %486 = shalt.err (!%p483_p7)
}
  0x2a   : > { %s556_s25 = smov 256   ;;  %s557_s26 = smov 16  }
  0x2b   : > { %396 = dma.hbm_to_vmem [thread:$0]  (!%p645_p13), %s641_s28, 1024, %s649_s30, %s651_s4, %s556_s25, %s556_s25, %s557_s26  }
  0x2c   : > { %p375_p9 = scmp.ge.s32.totalorder %s553_s12, 1  ;;  %p131_p1 = scmp.lt.s32.totalorder %s553_s12, 3 }
  0x2e   : > { %p132_p3 = pnand %p375_p9, %p131_p1 }
  0x2f   : > { %s682_s27 = sand.u32 (!%p132_p3), 1, %s545_s10  }
  0x30   : > { %135 = sbr.rel (%p132_p3) target bundleno = 660 (0x294), region = 28  ;;  %s376_s29 = sshll.u32 (!%p132_p3), %s682_s27, 6 }
  0x31   : > { %s138_s5 = scalar_lea.sflag (!%p132_p3), [#allocation3], %s682_s27  ;;  %s141_s6 = scalar_lea.vmem (!%p132_p3), [#allocation2], %s376_s29 }
  0x37   : > { %532 = dma.done.wait (%p621_p6), %s138_s5, 1024  }
  0x38   : > { %534 = vsyncadd (%p621_p6), %s138_s5, 4294966272  ;;  %v692_v0 = vld [vmem:[%s141_s6] sm:$0xff]  ;;  %v694_v1 = vld [vmem:[%s141_s6 + $0x8] sm:$0xff]  ;;  %vm190_vm0 = vcmask 64512   ;;  %s558_s16 = smov 8   ;;  %s559_s17 = smov 120  }
  0x39   : > { %v696_v2 = vld [vmem:[%s141_s6 + $0x20] sm:$0xff]  ;;  %v170_v3 = vadd.f32 %v694_v1, %v692_v0  ;;  %v700_v4 = vld [vmem:[%s141_s6 + $0x28] sm:$0xff]  ;;  %v702_v5 = vld [vmem:[%s141_s6 + $0x10] sm:$0xff]  ;;  %s161_s19 = scalar_lea.vmem [#allocation5], %s376_s29  ;;  %s388_s23 = sshll.u32 %s599_s13, 10 }
  0x3a   : > { %v704_v6 = vld [vmem:[%s141_s6 + $0x18] sm:$0xff]  ;;  %v176_v7 = vadd.f32 %v700_v4, %v696_v2  ;;  %v708_v8 = vld [vmem:[%s141_s6 + $0x30] sm:$0xff]  ;;  %v182_v12 = vld [vmem:[%s797_s1] sm:$0xff]  ;;  %s296_s24 = sshll.u32 %s161_s19, 4  ;;  %s748_s29 = scalar_lea.hbm %s798_s2, %s388_s23  ;;  %s750_s24 = int_to_ptr.vmem [resolvable:$true] %s296_s24 }
  0x3b   : > { %v710_v9 = vld [vmem:[%s141_s6 + $0x38] sm:$0xff]  ;;  %171 = vadd.xlane.f32.xlu0 %v170_v3  ;;  %v173_v10 = vadd.f32 %v704_v6, %v702_v5  ;;  %v184_v15 = vld [vmem:[%s797_s1 + $0x10] sm:$0xff]  ;;  %v183_v16 = vld [vmem:[%s797_s1 + $0x8] sm:$0xff]  ;;  %s283_s13 = scalar_lea.sflag [#allocation4], %s682_s27  ;;  %s487_s5 = scalar_lea.vmem %s750_s24, 1024 }
  0x3c   : > { %177 = vadd.xlane.f32.xlu1 %v176_v7  ;;  %v179_v11 = vadd.f32 %v710_v9, %v708_v8  ;;  %v185_v18 = vld [vmem:[%s797_s1 + $0x18] sm:$0xff]  ;;  %p488_p6 = scmp.ne.s32.totalorder %s750_s24, %s487_s5  ;;  %p805_p11 = scmp.ne.s32.totalorder %s802_s21, 0 }
  0x3d   : > { %s560_s6 = smov [#allocation5]  }
  0x3e   : > { %p489_p12 = pnand %p488_p6, %p805_p11  ;;  %s491_s20 = sshll.u32 %s560_s6, 4  ;;  %s492_s20 = int_to_ptr.vmem [resolvable:$false] %s491_s20 }
  0x3f   : > { %174 = vadd.xlane.f32.xlu0 %v173_v10  ;;  %s493_s28 = scalar_lea.vmem %s492_s20, 2048  ;;  %p494_p8 = scmp.lt.s32.totalorder %s750_s24, %s492_s20 }
  0x40   : > { %180 = vadd.xlane.f32.xlu1 %v179_v11  ;;  %p490_p13 = pneg %p489_p12  ;;  %p495_p10 = scmp.lt.s32.totalorder %s493_s28, %s487_s5 }
  0x42   : > { %p496_p0 = por %p495_p10, %p494_p8 }
  0x44   : > { %p497_p2 = pnand %p496_p0, %p490_p13 }
  0xc8   : > { %v172_v13 = vpop.xlane.xlu0 %171 }
  0xc9   : > { %v178_v14 = vpop.xlane.xlu1 %177  ;;  %v186_v17 = vmul.f32 %v182_v12, %v172_v13 }
  0xca   : > { %v188_v20 = vmul.f32 %v184_v15, %v178_v14 }
  0xcb   : > { %v191_v24 = vsel %vm190_vm0, %v186_v17, 0.0 }
  0xcc   : > { %v175_v19 = vpop.xlane.xlu0 %174  ;;  %v194_v27 = vsel %vm190_vm0, %v188_v20, 0.0 }
  0xcd   : > { %v187_v21 = vmul.f32 %v183_v16, %v175_v19  ;;  %v181_v22 = vpop.xlane.xlu1 %180 }
  0xce   : > { %v189_v23 = vmul.f32 %v185_v18, %v181_v22 }
  0xcf   : > { %v192_v25 = vsel %vm190_vm0, %v187_v21, 0.0 }
  0xd0   : > { %v193_v26 = vadd.f32 %v192_v25, %v191_v24  ;;  %v196_v28 = vsel %vm190_vm0, %v189_v23, 0.0 }
  0xd2   : > { %v195_v29 = vadd.f32 %v194_v27, %v193_v26 }
  0xd4   : > { %v197_v30 = vadd.f32 %v196_v28, %v195_v29 }
  0xd6   : > { %v198_v31 = vrot.slane %v197_v30, 4 }
  0xd8   : > { %v199_v32 = vadd.f32 %v198_v31, %v197_v30 }
  0xda   : > { %v200_v33 = vrot.slane %v199_v32, 2 }
  0xdc   : > { %v201_v34 = vadd.f32 %v200_v33, %v199_v32 }
  0xde   : > { %v202_v35 = vrot.slane %v201_v34, 1 }
  0xe0   : > { %v203_v36 = vadd.f32 %v202_v35, %v201_v34 }
  0xe2   : > { %v204_v37 = vmax.f32 %v203_v36, 0.0 }
  0xe4   : > { %v205_v38 = vmin.f32 %v204_v37, 6.0 }
  0xe6   : > { %207 = vrot.lane.b32.xlu0 %v205_v38, %s558_s16 }
 0x158   : > { %v208_v39 = vpop.permute.xlu0 %207 }
 0x159   : > { %v213_v40 = vmul.f32 %v208_v39, %v185_v18  ;;  %v210_v41 = vmul.f32 %v208_v39, %v182_v12  ;;  %v211_v42 = vmul.f32 %v208_v39, %v183_v16  ;;  %v212_v43 = vmul.f32 %v208_v39, %v184_v15 }
 0x15b   : > { %224 = vrot.lane.b32.xlu0 %v213_v40, %s559_s17  ;;  %218 = vrot.lane.b32.xlu1 %v210_v41, %s559_s17 }
 0x15f   : > { %220 = vrot.lane.b32.xlu1 %v211_v42, %s559_s17 }
 0x163   : > { %222 = vrot.lane.b32.xlu1 %v212_v43, %s559_s17 }
 0x1cd   : > { %v219_v44 = vpop.permute.xlu1 %218  ;;  %v225_v50 = vpop.permute.xlu0 %224 }
 0x1ce   : > { %v230_v45 = vsel %vm190_vm0, %v219_v44, 0.0  ;;  %v239_v51 = vsel %vm190_vm0, %v225_v50, 0.0 }
 0x1cf   : > { %231 = vadd.xlane.f32.xlu1 %v230_v45 }
 0x1d1   : > { %v221_v46 = vpop.permute.xlu1 %220 }
 0x1d2   : > { %v233_v47 = vsel %vm190_vm0, %v221_v46, 0.0 }
 0x1d3   : > { %234 = vadd.xlane.f32.xlu0 %v233_v47 }
 0x1d5   : > { %v223_v48 = vpop.permute.xlu1 %222 }
 0x1d6   : > { %v236_v49 = vsel %vm190_vm0, %v223_v48, 0.0 }
 0x1d7   : > { %237 = vadd.xlane.f32.xlu0 %v236_v49 }
 0x1db   : > { %240 = vadd.xlane.f32.xlu0 %v239_v51 }
 0x25c   : > { %v232_v52 = vpop.xlane.xlu1 %231 }
 0x25d   : > { %v378_v53 = vmul.f32 -1.442695, %v232_v52 }
 0x25f   : > { %441 = vpow2.f32 %v378_v53 }
 0x260   : > { %v235_v54 = vpop.xlane.xlu0 %234 }
 0x261   : > { %v379_v55 = vmul.f32 -1.442695, %v235_v54 }
 0x263   : > { %443 = vpow2.f32 %v379_v55 }
 0x264   : > { %v238_v56 = vpop.xlane.xlu0 %237 }
 0x265   : > { %v380_v57 = vmul.f32 -1.442695, %v238_v56 }
 0x267   : > { %445 = vpow2.f32 %v380_v57 }
 0x268   : > { %v241_v58 = vpop.xlane.xlu0 %240 }
 0x269   : > { %v442_v59 = vpop.eup %441  ;;  %v381_v60 = vmul.f32 -1.442695, %v241_v58 }
 0x26a   : > { %v254_v61 = vadd.f32 1.0, %v442_v59 }
 0x26b   : > { %447 = vpow2.f32 %v381_v60 }
 0x26c   : > { %449 = vrcp.f32 %v254_v61 }
 0x26d   : > { %v444_v62 = vpop.eup %443 }
 0x26e   : > { %v255_v63 = vadd.f32 1.0, %v444_v62 }
 0x270   : > { %451 = vrcp.f32 %v255_v63 }
 0x271   : > { %v446_v3 = vpop.eup %445 }
 0x272   : > { %v256_v7 = vadd.f32 1.0, %v446_v3 }
 0x274   : > { %453 = vrcp.f32 %v256_v7 }
 0x275   : > { %v448_v10 = vpop.eup %447 }
 0x276   : > { %v450_v11 = vpop.eup %449  ;;  %v257_v12 = vadd.f32 1.0, %v448_v10 }
 0x277   : > { %v266_v13 = vmul.f32 %v450_v11, %v692_v0  ;;  %v267_v14 = vmul.f32 %v450_v11, %v694_v1 }
 0x278   : > { %455 = vrcp.f32 %v257_v12 }
 0x279   : > { %274 = vst [vmem:[%s161_s19] sm:$0xff] %v266_v13  ;;  %275 = vst [vmem:[%s161_s19 + $0x8] sm:$0xff] %v267_v14 }
 0x27a   : > { %v452_v15 = vpop.eup %451 }
 0x27b   : > { %v268_v16 = vmul.f32 %v452_v15, %v702_v5  ;;  %v269_v17 = vmul.f32 %v452_v15, %v704_v6 }
 0x27d   : > { %276 = vst [vmem:[%s161_s19 + $0x10] sm:$0xff] %v268_v16  ;;  %277 = vst [vmem:[%s161_s19 + $0x18] sm:$0xff] %v269_v17 }
 0x27e   : > { %v454_v18 = vpop.eup %453 }
 0x27f   : > { %v270_v19 = vmul.f32 %v454_v18, %v696_v2  ;;  %v271_v0 = vmul.f32 %v454_v18, %v700_v4 }
 0x281   : > { %278 = vst [vmem:[%s161_s19 + $0x20] sm:$0xff] %v270_v19  ;;  %279 = vst [vmem:[%s161_s19 + $0x28] sm:$0xff] %v271_v0 }
 0x282   : > { %v456_v1 = vpop.eup %455 }
 0x283   : > { %v272_v2 = vmul.f32 %v456_v1, %v708_v8  ;;  %v273_v5 = vmul.f32 %v456_v1, %v710_v9 }
 0x285   : > { %280 = vst [vmem:[%s161_s19 + $0x30] sm:$0xff] %v272_v2  ;;  %281 = vst [vmem:[%s161_s19 + $0x38] sm:$0xff] %v273_v5 }
 0x286   : > { %500 = shalt.err (!%p497_p2)
}
 0x287   : > { %s501_s30 = scalar_lea.hbm %s748_s29, 1024  ;;  %s505_s7 = scalar_lea.hbm %s798_s2, 2048 }
 0x288   : > { %p502_p4 = scmp.ne.s32.totalorder %s748_s29, %s501_s30  ;;  %p506_p9 = scmp.lt.u32.totalorder %s748_s29, %s798_s2 }
 0x289   : > { %p507_p1 = scmp.lt.u32.totalorder %s505_s7, %s501_s30  ;;  %p509_p6 = scmp.lt.u32.totalorder %s501_s30, %s748_s29 }
 0x28a   : > { %p503_p5 = pnand %p502_p4, %p805_p11 }
 0x28b   : > { %p508_p3 = por %p507_p1, %p506_p9 }
 0x28c   : > { %p504_p7 = pneg %p503_p5 }
 0x28d   : > { %p510_p12 = por %p509_p6, %p508_p3 }
 0x28f   : > { %p511_p13 = pnand %p510_p12, %p504_p7 }
 0x291   : > { %514 = shalt.err (!%p511_p13)
}
 0x292   : > { %s561_s16 = smov 256   ;;  %s562_s17 = smov 16  }
 0x293   : > { %391 = dma.vmem_to_hbm [thread:$0]  (%p805_p11), %s750_s24, 1024, %s748_s29, %s283_s13, %s561_s16, %s561_s16, %s562_s17  }
 0x294 PF: > { %s311_s19 = sand.u32 1, %s541_s9   ;;  %p806_p8 = scmp.ne.s32.totalorder %s803_s22, 0 }
 0x295   : > { %p807_p10 = scmp.ge.s32.totalorder %s553_s12, 2  ;;  %s312_s23 = scalar_lea.sflag [#allocation4], %s311_s19 }
 0x297   : > { %p398_p0 = pnand %p807_p10, %p806_p8 }
 0x299   : > { %536 = dma.done.wait (!%p398_p0), %s312_s23, 1024  }
 0x29a   : > { %538 = vsyncadd (!%p398_p0), %s312_s23, 4294966272  ;;  %p15_p2 = scmp.ge.s32.totalorder %s603_s15, 4   ;;  %s808_s9 = smov %s545_s10 }
 0x29b   : > { %s809_s10 = smov %s549_s11  ;;  %s810_s11 = smov %s615_s18 }
 0x29c   : > { %s811_s12 = smov %s603_s15  ;;  %17 = sbr.rel (!%p15_p2) target bundleno = 5 (0x5), region = 73 }
 0x2a3   :  { %317 = vsyncpa [#allocation3], 1 }
 0x2a4   :  { %319 = vsyncpa [#allocation3 + $0x1], 1 }
 0x2a5   :  { %320 = vsyncpa [#allocation4], 1 }
 0x2a6   :  { %322 = vsyncpa [#allocation4 + $0x1], 1 }

</bundles_post_ra>
